<compile_context>
chip_gen: v7x
topology: tpu7x:2x2x1
jax: 0.10.0
libtpu: 0.0.40
codegen_flags: <defaults>
</compile_context>

<pallas_src>
import functools

import jax
import jax.numpy as jnp
from jax.experimental import pallas as pl
from jax.experimental.pallas import tpu as pltpu


def _block_kernel(x_ref, wdw_ref, mask_ref, b1_ref, wpw_ref, b2_ref, out_ref,
                  *, H, W, Cin, Cout, BT):
  """One batch tile (BT images) per grid step; (channels, H*W) layout.

  x_ref   : (BT, Cin, H*W)  input tile
  wdw_ref : (9, Cin, 1)     per-tap depthwise weight * BN1 scale (f32)
  mask_ref: (9, 1, H*W)     per-tap halo masks (implements padding=1)
  b1_ref  : (Cin, 1)        folded BN1 bias
  wpw_ref : (Cout, Cin)     pointwise weight * BN2 scale (MXU operand dtype)
  b2_ref  : (Cout, 1)       folded BN2 bias
  out_ref : (BT, Cout, H*W)
  """
  HW = H * W
  f32 = jnp.float32

  b1 = b1_ref[...].astype(f32)                    # (Cin, 1)
  b2 = b2_ref[...].astype(f32)                    # (Cout, 1)
  wpw = wpw_ref[...]                              # (Cout, Cin), bf16 or f32

  # Per-tap (weight * halo-mask) planes, built once per grid step and reused
  # across the BT images.  Center tap (index 4) needs no mask (shift 0).
  shifts = {}
  wm = {}
  for dh in range(3):
    for dw in range(3):
      tap = dh * 3 + dw
      shifts[tap] = (dh - 1) * W + (dw - 1)
      w_tap = wdw_ref[tap].astype(f32)            # (Cin, 1)
      if tap == 4:
        wm[tap] = w_tap                           # broadcasts over HW
      else:
        wm[tap] = w_tap * mask_ref[tap].astype(f32)   # (Cin, HW)

  for b in range(BT):
    x = x_ref[b].astype(f32)                      # (Cin, HW)

    # ---- depthwise 3x3, stride 1, padding 1: center tap + 8 rolled taps ----
    acc = x * wm[4]
    for tap in range(9):
      if tap == 4:
        continue
      s = shifts[tap]
      # y[:, i] = x[:, i + s]; wrapped lanes are zeroed by the halo mask
      # already folded into wm[tap], so a circular roll is exact.
      acc = acc + pltpu.roll(x, shift=(-s) % HW, axis=1) * wm[tap]

    # ---- BN1 bias + ReLU (scale folded into depthwise weights) ----
    h1 = jnp.maximum(acc + b1, 0.0)

    # ---- pointwise 1x1: (Cout, Cin) x (Cin, HW) -> (Cout, HW), f32 accum ----
    o = jnp.dot(wpw, h1.astype(wpw.dtype), preferred_element_type=f32)

    # ---- BN2 bias + ReLU ----
    out_ref[b] = jnp.maximum(o + b2, 0.0).astype(out_ref.dtype)


def _pick_batch_tile(B, Cin, Cout, HW, *, vmem_budget_bytes=16 << 20):
  """Largest divisor of B that fits the VMEM budget; keep >=2 grid steps."""
  per_img = 2 * (Cin + Cout) * HW * 4          # double-buffered f32 in+out tiles
  cap = max(1, vmem_budget_bytes // max(per_img, 1))
  if B >= 2:
    # Keep at least two grid steps so v7x's two TensorCores both get work.
    cap = min(cap, max(1, B // 2))
  bt = 1
  for d in range(1, min(B, cap) + 1):
    if B % d == 0:
      bt = d
  return bt


def block_forward(x_nchw, w_dw, bn1, w_pw, bn2, *, stride=1, eps=1e-5,
                  mxu_dtype=jnp.bfloat16, batch_tile=None):
  """x_nchw: (B, Cin, H, W) like PyTorch. Returns (B, Cout, H, W)."""
  if stride != 1:
    # TODO(synk): stride > 1 not implemented in the fused kernel (module default is 1).
    raise NotImplementedError("stride must be 1")

  B, Cin, H, W = x_nchw.shape
  Cout = w_pw.shape[0]
  HW = H * W

  # Flatten spatial dims (row-major, free) -> (B, Cin, HW). No transpose/pad.
  x = x_nchw.reshape(B, Cin, HW).astype(jnp.float32)

  # Fold BatchNorm (eval mode) into per-channel scale/bias (all in f32).
  def fold(bn):
    gamma, beta, mean, var = (jnp.asarray(t, jnp.float32) for t in bn)
    scale = gamma / jnp.sqrt(var + eps)
    bias = beta - mean * scale
    return scale, bias

  s1, b1 = fold(bn1)
  s2, b2 = fold(bn2)

  # Depthwise weight (Cin,1,3,3) -> per-tap (9, Cin, 1), BN1 scale folded (f32).
  wdw = w_dw[:, 0, :, :].astype(jnp.float32) * s1[:, None, None]   # (Cin,3,3)
  wdw_taps = jnp.transpose(wdw, (1, 2, 0)).reshape(9, Cin, 1)      # tap = dh*3+dw

  # Per-tap halo masks over the flat spatial axis (implements padding=1 and
  # zeroes lanes that a circular roll would wrap).  (9, 1, HW), tiny.
  hw = jnp.arange(HW)
  row, col = hw // W, hw % W
  masks = []
  for dh in range(3):
    for dw in range(3):
      r, c = row + dh - 1, col + dw - 1
      masks.append(((r >= 0) & (r < H) & (c >= 0) & (c < W)).astype(jnp.float32))
  mask = jnp.stack(masks).reshape(9, 1, HW)

  # Pointwise weight (Cout,Cin,1,1) -> (Cout, Cin); fold BN2 scale in f32,
  # cast once to the MXU operand dtype.
  wpw = (w_pw[:, :, 0, 0].astype(jnp.float32) * s2[:, None]).astype(mxu_dtype)

  b1c = b1[:, None]                                                # (Cin, 1)
  b2c = b2[:, None]                                                # (Cout, 1)

  BT = batch_tile if batch_tile is not None else _pick_batch_tile(B, Cin, Cout, HW)
  assert B % BT == 0, f"batch tile {BT} must divide batch {B}"

  kernel = functools.partial(_block_kernel, H=H, W=W, Cin=Cin, Cout=Cout, BT=BT)

  out_flat = pl.pallas_call(
      kernel,
      out_shape=jax.ShapeDtypeStruct((B, Cout, HW), x_nchw.dtype),
      grid_spec=pltpu.PrefetchScalarGridSpec(
          num_scalar_prefetch=0,
          grid=(B // BT,),
          in_specs=[
              pl.BlockSpec((BT, Cin, HW), lambda b: (b, 0, 0)),
              pl.BlockSpec((9, Cin, 1), lambda b: (0, 0, 0)),
              pl.BlockSpec((9, 1, HW), lambda b: (0, 0, 0)),
              pl.BlockSpec((Cin, 1), lambda b: (0, 0)),
              pl.BlockSpec((Cout, Cin), lambda b: (0, 0)),
              pl.BlockSpec((Cout, 1), lambda b: (0, 0)),
          ],
          out_specs=pl.BlockSpec((BT, Cout, HW), lambda b: (b, 0, 0)),
      ),
      compiler_params=pltpu.CompilerParams(
          dimension_semantics=("parallel",),
          vmem_limit_bytes=32 * 1024 * 1024),
  )(x, wdw_taps, mask, b1c, wpw, b2c)

  return out_flat.reshape(B, Cout, H, W)


# ----------------------- pure-JAX reference (for checking) -----------------------
def block_reference(x_nchw, w_dw, bn1, w_pw, bn2, *, eps=1e-5):
  B, Cin, H, W = x_nchw.shape
  x = jnp.transpose(x_nchw, (0, 2, 3, 1)).astype(jnp.float32)

  # depthwise 3x3, HWIO with feature_group_count=Cin
  k_dw = jnp.transpose(w_dw, (2, 3, 1, 0)).astype(jnp.float32)  # (3,3,1,Cin)
  y = jax.lax.conv_general_dilated(
      x, k_dw, window_strides=(1, 1), padding=((1, 1), (1, 1)),
      dimension_numbers=("NHWC", "HWIO", "NHWC"), feature_group_count=Cin)

  def bn_relu(y, bn):
    gamma, beta, mean, var = bn
    return jnp.maximum((y - mean) / jnp.sqrt(var + eps) * gamma + beta, 0.0)

  y = bn_relu(y, bn1)
  k_pw = jnp.transpose(w_pw[:, :, 0, 0], (1, 0)).astype(jnp.float32)
  y = jnp.einsum("bhwc,cd->bhwd", y, k_pw)
  y = bn_relu(y, bn2)
  return jnp.transpose(y, (0, 3, 1, 2))


if __name__ == "__main__":
  B, Cin, Cout, H, W = 2, 8, 16, 16, 16

  key = jax.random.PRNGKey(0)
  ks = jax.random.split(key, 10)

  x = jax.random.normal(ks[0], (B, Cin, H, W), jnp.float32)

  # conv1: depthwise (Cin, 1, 3, 3); conv2: pointwise (Cout, Cin, 1, 1)
  w_dw = jax.random.normal(ks[1], (Cin, 1, 3, 3), jnp.float32) * 0.2
  w_pw = jax.random.normal(ks[2], (Cout, Cin, 1, 1), jnp.float32) * 0.2

  bn1 = (jax.random.normal(ks[3], (Cin,)) * 0.1 + 1.0,      # gamma
         jax.random.normal(ks[4], (Cin,)) * 0.1,            # beta
         jax.random.normal(ks[5], (Cin,)) * 0.1,            # running_mean
         jnp.abs(jax.random.normal(ks[6], (Cin,))) + 0.5)   # running_var
  bn2 = (jax.random.normal(ks[7], (Cout,)) * 0.1 + 1.0,
         jax.random.normal(ks[8], (Cout,)) * 0.1,
         jax.random.normal(ks[9], (Cout,)) * 0.1,
         jnp.abs(jax.random.normal(ks[0], (Cout,))) + 0.5)

  ref = jax.block_until_ready(block_reference(x, w_dw, bn1, w_pw, bn2))

  # Exact-math check: f32 MXU operands, tight tolerance.
  out_f32 = jax.block_until_ready(
      block_forward(x, w_dw, bn1, w_pw, bn2, mxu_dtype=jnp.float32))
  assert out_f32.shape == (B, Cout, H, W)
  assert jnp.allclose(out_f32, ref, atol=1e-4, rtol=1e-4), \
      f"f32 path: max abs err {jnp.max(jnp.abs(out_f32 - ref))}"

  # Default perf path: bf16 MXU operands, f32 accumulation (looser tolerance).
  out = jax.block_until_ready(block_forward(x, w_dw, bn1, w_pw, bn2))
  assert out.shape == (B, Cout, H, W)
  assert jnp.allclose(out, ref, atol=3e-2, rtol=3e-2), \
      f"bf16 path: max abs err {jnp.max(jnp.abs(out - ref))}"

  print("KERNEL_OK")
</pallas_src>

<mosaic_0001>
module attributes {stable_mosaic.version = 11 : i64} {
  func.func @_block_kernel(%arg0: i32, %arg1: memref<1x8x256xf32, #tpu.memory_space<vmem>>, %arg2: memref<9x8x1xf32, #tpu.memory_space<vmem>>, %arg3: memref<9x1x256xf32, #tpu.memory_space<vmem>>, %arg4: memref<8x1xf32, #tpu.memory_space<vmem>>, %arg5: memref<16x8xf32, #tpu.memory_space<vmem>>, %arg6: memref<16x1xf32, #tpu.memory_space<vmem>>, %arg7: memref<1x16x256xf32, #tpu.memory_space<vmem>>) attributes {dimension_semantics = [#tpu.dimension_semantics<parallel>], iteration_bounds = array<i64: 2>, scalar_prefetch = 0 : i64, scratch_operands = 0 : i64, tpu.core_type = #tpu.core_type<tc>, window_params = [{transform_indices = @transform_0, window_bounds = array<i64: 1, 8, 256>}, {pipeline_mode = #tpu.pipeline_mode<synchronous>, transform_indices = @transform_1, window_bounds = array<i64: 9, 8, 1>}, {pipeline_mode = #tpu.pipeline_mode<synchronous>, transform_indices = @transform_2, window_bounds = array<i64: 9, 1, 256>}, {pipeline_mode = #tpu.pipeline_mode<synchronous>, transform_indices = @transform_3, window_bounds = array<i64: 8, 1>}, {pipeline_mode = #tpu.pipeline_mode<synchronous>, transform_indices = @transform_4, window_bounds = array<i64: 16, 8>}, {pipeline_mode = #tpu.pipeline_mode<synchronous>, transform_indices = @transform_5, window_bounds = array<i64: 16, 1>}, {transform_indices = @transform_6, window_bounds = array<i64: 1, 16, 256>}]} {
    %c0 = arith.constant 0 : index
    %c0_0 = arith.constant 0 : index
    %0 = vector.load %arg4[%c0, %c0_0] : memref<8x1xf32, #tpu.memory_space<vmem>>, vector<8x1xf32>
    %c0_1 = arith.constant 0 : index
    %c0_2 = arith.constant 0 : index
    %1 = vector.load %arg6[%c0_1, %c0_2] : memref<16x1xf32, #tpu.memory_space<vmem>>, vector<16x1xf32>
    %c0_3 = arith.constant 0 : index
    %c0_4 = arith.constant 0 : index
    %2 = vector.load %arg5[%c0_3, %c0_4] : memref<16x8xf32, #tpu.memory_space<vmem>>, vector<16x8xf32>
    %c0_5 = arith.constant 0 : index
    %c0_6 = arith.constant 0 : index
    %c0_7 = arith.constant 0 : index
    %3 = vector.load %arg2[%c0_5, %c0_6, %c0_7] : memref<9x8x1xf32, #tpu.memory_space<vmem>>, vector<1x8x1xf32>
    %4 = vector.shape_cast %3 : vector<1x8x1xf32> to vector<8x1xf32>
    %c0_8 = arith.constant 0 : index
    %c0_9 = arith.constant 0 : index
    %c0_10 = arith.constant 0 : index
    %5 = vector.load %arg3[%c0_8, %c0_9, %c0_10] : memref<9x1x256xf32, #tpu.memory_space<vmem>>, vector<1x1x256xf32>
    %6 = vector.shape_cast %5 : vector<1x1x256xf32> to vector<1x256xf32>
    %7 = vector.broadcast %4 : vector<8x1xf32> to vector<8x256xf32>
    %8 = vector.broadcast %6 : vector<1x256xf32> to vector<8x256xf32>
    %9 = arith.mulf %7, %8 : vector<8x256xf32>
    %c1 = arith.constant 1 : index
    %c0_11 = arith.constant 0 : index
    %c0_12 = arith.constant 0 : index
    %10 = vector.load %arg2[%c1, %c0_11, %c0_12] : memref<9x8x1xf32, #tpu.memory_space<vmem>>, vector<1x8x1xf32>
    %11 = vector.shape_cast %10 : vector<1x8x1xf32> to vector<8x1xf32>
    %c1_13 = arith.constant 1 : index
    %c0_14 = arith.constant 0 : index
    %c0_15 = arith.constant 0 : index
    %12 = vector.load %arg3[%c1_13, %c0_14, %c0_15] : memref<9x1x256xf32, #tpu.memory_space<vmem>>, vector<1x1x256xf32>
    %13 = vector.shape_cast %12 : vector<1x1x256xf32> to vector<1x256xf32>
    %14 = vector.broadcast %11 : vector<8x1xf32> to vector<8x256xf32>
    %15 = vector.broadcast %13 : vector<1x256xf32> to vector<8x256xf32>
    %16 = arith.mulf %14, %15 : vector<8x256xf32>
    %c2 = arith.constant 2 : index
    %c0_16 = arith.constant 0 : index
    %c0_17 = arith.constant 0 : index
    %17 = vector.load %arg2[%c2, %c0_16, %c0_17] : memref<9x8x1xf32, #tpu.memory_space<vmem>>, vector<1x8x1xf32>
    %18 = vector.shape_cast %17 : vector<1x8x1xf32> to vector<8x1xf32>
    %c2_18 = arith.constant 2 : index
    %c0_19 = arith.constant 0 : index
    %c0_20 = arith.constant 0 : index
    %19 = vector.load %arg3[%c2_18, %c0_19, %c0_20] : memref<9x1x256xf32, #tpu.memory_space<vmem>>, vector<1x1x256xf32>
    %20 = vector.shape_cast %19 : vector<1x1x256xf32> to vector<1x256xf32>
    %21 = vector.broadcast %18 : vector<8x1xf32> to vector<8x256xf32>
    %22 = vector.broadcast %20 : vector<1x256xf32> to vector<8x256xf32>
    %23 = arith.mulf %21, %22 : vector<8x256xf32>
    %c3 = arith.constant 3 : index
    %c0_21 = arith.constant 0 : index
    %c0_22 = arith.constant 0 : index
    %24 = vector.load %arg2[%c3, %c0_21, %c0_22] : memref<9x8x1xf32, #tpu.memory_space<vmem>>, vector<1x8x1xf32>
    %25 = vector.shape_cast %24 : vector<1x8x1xf32> to vector<8x1xf32>
    %c3_23 = arith.constant 3 : index
    %c0_24 = arith.constant 0 : index
    %c0_25 = arith.constant 0 : index
    %26 = vector.load %arg3[%c3_23, %c0_24, %c0_25] : memref<9x1x256xf32, #tpu.memory_space<vmem>>, vector<1x1x256xf32>
    %27 = vector.shape_cast %26 : vector<1x1x256xf32> to vector<1x256xf32>
    %28 = vector.broadcast %25 : vector<8x1xf32> to vector<8x256xf32>
    %29 = vector.broadcast %27 : vector<1x256xf32> to vector<8x256xf32>
    %30 = arith.mulf %28, %29 : vector<8x256xf32>
    %c4 = arith.constant 4 : index
    %c0_26 = arith.constant 0 : index
    %c0_27 = arith.constant 0 : index
    %31 = vector.load %arg2[%c4, %c0_26, %c0_27] : memref<9x8x1xf32, #tpu.memory_space<vmem>>, vector<1x8x1xf32>
    %32 = vector.shape_cast %31 : vector<1x8x1xf32> to vector<8x1xf32>
    %c5 = arith.constant 5 : index
    %c0_28 = arith.constant 0 : index
    %c0_29 = arith.constant 0 : index
    %33 = vector.load %arg2[%c5, %c0_28, %c0_29] : memref<9x8x1xf32, #tpu.memory_space<vmem>>, vector<1x8x1xf32>
    %34 = vector.shape_cast %33 : vector<1x8x1xf32> to vector<8x1xf32>
    %c5_30 = arith.constant 5 : index
    %c0_31 = arith.constant 0 : index
    %c0_32 = arith.constant 0 : index
    %35 = vector.load %arg3[%c5_30, %c0_31, %c0_32] : memref<9x1x256xf32, #tpu.memory_space<vmem>>, vector<1x1x256xf32>
    %36 = vector.shape_cast %35 : vector<1x1x256xf32> to vector<1x256xf32>
    %37 = vector.broadcast %34 : vector<8x1xf32> to vector<8x256xf32>
    %38 = vector.broadcast %36 : vector<1x256xf32> to vector<8x256xf32>
    %39 = arith.mulf %37, %38 : vector<8x256xf32>
    %c6 = arith.constant 6 : index
    %c0_33 = arith.constant 0 : index
    %c0_34 = arith.constant 0 : index
    %40 = vector.load %arg2[%c6, %c0_33, %c0_34] : memref<9x8x1xf32, #tpu.memory_space<vmem>>, vector<1x8x1xf32>
    %41 = vector.shape_cast %40 : vector<1x8x1xf32> to vector<8x1xf32>
    %c6_35 = arith.constant 6 : index
    %c0_36 = arith.constant 0 : index
    %c0_37 = arith.constant 0 : index
    %42 = vector.load %arg3[%c6_35, %c0_36, %c0_37] : memref<9x1x256xf32, #tpu.memory_space<vmem>>, vector<1x1x256xf32>
    %43 = vector.shape_cast %42 : vector<1x1x256xf32> to vector<1x256xf32>
    %44 = vector.broadcast %41 : vector<8x1xf32> to vector<8x256xf32>
    %45 = vector.broadcast %43 : vector<1x256xf32> to vector<8x256xf32>
    %46 = arith.mulf %44, %45 : vector<8x256xf32>
    %c7 = arith.constant 7 : index
    %c0_38 = arith.constant 0 : index
    %c0_39 = arith.constant 0 : index
    %47 = vector.load %arg2[%c7, %c0_38, %c0_39] : memref<9x8x1xf32, #tpu.memory_space<vmem>>, vector<1x8x1xf32>
    %48 = vector.shape_cast %47 : vector<1x8x1xf32> to vector<8x1xf32>
    %c7_40 = arith.constant 7 : index
    %c0_41 = arith.constant 0 : index
    %c0_42 = arith.constant 0 : index
    %49 = vector.load %arg3[%c7_40, %c0_41, %c0_42] : memref<9x1x256xf32, #tpu.memory_space<vmem>>, vector<1x1x256xf32>
    %50 = vector.shape_cast %49 : vector<1x1x256xf32> to vector<1x256xf32>
    %51 = vector.broadcast %48 : vector<8x1xf32> to vector<8x256xf32>
    %52 = vector.broadcast %50 : vector<1x256xf32> to vector<8x256xf32>
    %53 = arith.mulf %51, %52 : vector<8x256xf32>
    %c8 = arith.constant 8 : index
    %c0_43 = arith.constant 0 : index
    %c0_44 = arith.constant 0 : index
    %54 = vector.load %arg2[%c8, %c0_43, %c0_44] : memref<9x8x1xf32, #tpu.memory_space<vmem>>, vector<1x8x1xf32>
    %55 = vector.shape_cast %54 : vector<1x8x1xf32> to vector<8x1xf32>
    %c8_45 = arith.constant 8 : index
    %c0_46 = arith.constant 0 : index
    %c0_47 = arith.constant 0 : index
    %56 = vector.load %arg3[%c8_45, %c0_46, %c0_47] : memref<9x1x256xf32, #tpu.memory_space<vmem>>, vector<1x1x256xf32>
    %57 = vector.shape_cast %56 : vector<1x1x256xf32> to vector<1x256xf32>
    %58 = vector.broadcast %55 : vector<8x1xf32> to vector<8x256xf32>
    %59 = vector.broadcast %57 : vector<1x256xf32> to vector<8x256xf32>
    %60 = arith.mulf %58, %59 : vector<8x256xf32>
    %c0_48 = arith.constant 0 : index
    %c0_49 = arith.constant 0 : index
    %c0_50 = arith.constant 0 : index
    %61 = vector.load %arg1[%c0_48, %c0_49, %c0_50] : memref<1x8x256xf32, #tpu.memory_space<vmem>>, vector<1x8x256xf32>
    %62 = vector.shape_cast %61 : vector<1x8x256xf32> to vector<8x256xf32>
    %63 = vector.broadcast %32 : vector<8x1xf32> to vector<8x256xf32>
    %64 = arith.mulf %62, %63 : vector<8x256xf32>
    %c17_i32 = arith.constant 17 : i32
    %65 = tpu.dynamic_rotate %62 by %c17_i32 dim 1 : vector<8x256xf32>, i32 -> vector<8x256xf32>
    %66 = arith.mulf %65, %9 : vector<8x256xf32>
    %67 = arith.addf %64, %66 : vector<8x256xf32>
    %c16_i32 = arith.constant 16 : i32
    %68 = tpu.dynamic_rotate %62 by %c16_i32 dim 1 : vector<8x256xf32>, i32 -> vector<8x256xf32>
    %69 = arith.mulf %68, %16 : vector<8x256xf32>
    %70 = arith.addf %67, %69 : vector<8x256xf32>
    %c15_i32 = arith.constant 15 : i32
    %71 = tpu.dynamic_rotate %62 by %c15_i32 dim 1 : vector<8x256xf32>, i32 -> vector<8x256xf32>
    %72 = arith.mulf %71, %23 : vector<8x256xf32>
    %73 = arith.addf %70, %72 : vector<8x256xf32>
    %c1_i32 = arith.constant 1 : i32
    %74 = tpu.dynamic_rotate %62 by %c1_i32 dim 1 : vector<8x256xf32>, i32 -> vector<8x256xf32>
    %75 = arith.mulf %74, %30 : vector<8x256xf32>
    %76 = arith.addf %73, %75 : vector<8x256xf32>
    %c255_i32 = arith.constant 255 : i32
    %77 = tpu.dynamic_rotate %62 by %c255_i32 dim 1 : vector<8x256xf32>, i32 -> vector<8x256xf32>
    %78 = arith.mulf %77, %39 : vector<8x256xf32>
    %79 = arith.addf %76, %78 : vector<8x256xf32>
    %c241_i32 = arith.constant 241 : i32
    %80 = tpu.dynamic_rotate %62 by %c241_i32 dim 1 : vector<8x256xf32>, i32 -> vector<8x256xf32>
    %81 = arith.mulf %80, %46 : vector<8x256xf32>
    %82 = arith.addf %79, %81 : vector<8x256xf32>
    %c240_i32 = arith.constant 240 : i32
    %83 = tpu.dynamic_rotate %62 by %c240_i32 dim 1 : vector<8x256xf32>, i32 -> vector<8x256xf32>
    %84 = arith.mulf %83, %53 : vector<8x256xf32>
    %85 = arith.addf %82, %84 : vector<8x256xf32>
    %c239_i32 = arith.constant 239 : i32
    %86 = tpu.dynamic_rotate %62 by %c239_i32 dim 1 : vector<8x256xf32>, i32 -> vector<8x256xf32>
    %87 = arith.mulf %86, %60 : vector<8x256xf32>
    %88 = arith.addf %85, %87 : vector<8x256xf32>
    %89 = vector.broadcast %0 : vector<8x1xf32> to vector<8x256xf32>
    %90 = arith.addf %88, %89 : vector<8x256xf32>
    %cst = arith.constant 0.000000e+00 : f32
    %91 = vector.broadcast %cst : f32 to vector<8x256xf32>
    %92 = arith.maximumf %90, %91 : vector<8x256xf32>
    %cst_51 = arith.constant dense<0.000000e+00> : vector<16x256xf32>
    %93 = tpu.matmul %2, %92, %cst_51 {dimension_numbers = #tpu.dot_dimension_numbers<[1], [0], [0], [1], [0, 0, 1, 1], [], []>} : vector<16x8xf32>, vector<8x256xf32>, vector<16x256xf32> -> vector<16x256xf32>
    %94 = vector.broadcast %1 : vector<16x1xf32> to vector<16x256xf32>
    %95 = arith.addf %93, %94 : vector<16x256xf32>
    %cst_52 = arith.constant 0.000000e+00 : f32
    %96 = vector.broadcast %cst_52 : f32 to vector<16x256xf32>
    %97 = arith.maximumf %95, %96 : vector<16x256xf32>
    %c0_53 = arith.constant 0 : index
    %c0_54 = arith.constant 0 : index
    %c0_55 = arith.constant 0 : index
    %98 = vector.load %arg7[%c0_53, %c0_54, %c0_55] : memref<1x16x256xf32, #tpu.memory_space<vmem>>, vector<1x16x256xf32>
    %99 = vector.shape_cast %98 : vector<1x16x256xf32> to vector<16x256xf32>
    %100 = vector.shape_cast %97 : vector<16x256xf32> to vector<1x16x256xf32>
    tpu.vector_store %arg7[%c0_53, %c0_54, %c0_55], %100 {strides = array<i32>} : memref<1x16x256xf32, #tpu.memory_space<vmem>>, vector<1x16x256xf32>,
    return
  }
  func.func @transform_0(%arg0: i32) -> (i32, i32, i32) {
    %c0_i32 = arith.constant 0 : i32
    %c0_i32_0 = arith.constant 0 : i32
    %c0_i32_1 = arith.constant 0 : i32
    return %arg0, %c0_i32, %c0_i32_0 : i32, i32, i32
  }
  func.func @transform_1(%arg0: i32) -> (i32, i32, i32) {
    %c0_i32 = arith.constant 0 : i32
    %c0_i32_0 = arith.constant 0 : i32
    %c0_i32_1 = arith.constant 0 : i32
    %c0_i32_2 = arith.constant 0 : i32
    return %c0_i32, %c0_i32_0, %c0_i32_1 : i32, i32, i32
  }
  func.func @transform_2(%arg0: i32) -> (i32, i32, i32) {
    %c0_i32 = arith.constant 0 : i32
    %c0_i32_0 = arith.constant 0 : i32
    %c0_i32_1 = arith.constant 0 : i32
    %c0_i32_2 = arith.constant 0 : i32
    return %c0_i32, %c0_i32_0, %c0_i32_1 : i32, i32, i32
  }
  func.func @transform_3(%arg0: i32) -> (i32, i32) {
    %c0_i32 = arith.constant 0 : i32
    %c0_i32_0 = arith.constant 0 : i32
    %c0_i32_1 = arith.constant 0 : i32
    return %c0_i32, %c0_i32_0 : i32, i32
  }
  func.func @transform_4(%arg0: i32) -> (i32, i32) {
    %c0_i32 = arith.constant 0 : i32
    %c0_i32_0 = arith.constant 0 : i32
    %c0_i32_1 = arith.constant 0 : i32
    return %c0_i32, %c0_i32_0 : i32, i32
  }
  func.func @transform_5(%arg0: i32) -> (i32, i32) {
    %c0_i32 = arith.constant 0 : i32
    %c0_i32_0 = arith.constant 0 : i32
    %c0_i32_1 = arith.constant 0 : i32
    return %c0_i32, %c0_i32_0 : i32, i32
  }
  func.func @transform_6(%arg0: i32) -> (i32, i32, i32) {
    %c0_i32 = arith.constant 0 : i32
    %c0_i32_0 = arith.constant 0 : i32
    %c0_i32_1 = arith.constant 0 : i32
    return %arg0, %c0_i32, %c0_i32_0 : i32, i32, i32
  }
}

</mosaic_0001>

<bundles_post_ra>
// kernel: tpu_custom_call.1
= control target key start
LH: loop header
LB: loop body
LE: loop exit
PB: predicated region body
PF: predicated region fallthrough
CT: control target
= control target key end

     0   :  { %11 = vsyncpa [#allocation3], 0  ;;  %s1189_s0 = inlined_call_operand.vmem [shape: f32[2,8,256], index: 0, kind: input, shape index: {}]   ;;  %s1190_s1 = inlined_call_operand.vmem [shape: f32[9,8,1], index: 1, kind: input, shape index: {}]   ;;  %s1191_s2 = inlined_call_operand.vmem [shape: f32[9,1,256], index: 2, kind: input, shape index: {}]   ;;  %s1192_s3 = inlined_call_operand.vmem [shape: f32[8,1], index: 3, kind: input, shape index: {}]   ;;  %s1193_s4 = inlined_call_operand.vmem [shape: f32[16,8], index: 4, kind: input, shape index: {}]   ;;  %s1194_s5 = inlined_call_operand.vmem [shape: f32[16,1], index: 5, kind: input, shape index: {}]   ;;  %s1195_s6 = inlined_call_operand.hbm [shape: f32[2,16,256], index: 6, kind: output, shape index: {}]  }
   0x1   :  { %13 = vsyncpa [#allocation3 + $0x1], 0  ;;  %s913_s21 = smov 0   ;;  %s915_s22 = smov 0  }
   0x2   :  { %s917_s23 = smov 0   ;;  %s919_s24 = smov 0  }
   0x3 LB: > { %s934_s25 = sadd.s32 4294967295, %s864_s24   ;;  %s717_s26 = sadd.s32 4294967294, %s864_s24   ;;  %s864_s24 = sphi %s919_s24, %s1201_s24   ;;  %s860_s23 = sphi %s917_s23, %s1200_s23   ;;  %s856_s22 = sphi %s915_s22, %s1199_s22   ;;  %s852_s21 = sphi %s913_s21, %s1198_s21  }
   0x4   : > { %s938_s27 = sadd.s32 1, %s864_s24   ;;  %s157_s28 = sadd.s32 1, %s860_s23 }
   0x5   : > { %s154_s29 = ssub.s32 %s864_s24, %s938_s27  ;;  %p167_p0 = scmp.ne.s32.totalorder %s860_s23, %s856_s22 }
   0x6   : > { %p155_p1 = scmp.eq.s32.totalorder %s154_s29, 0  ;;  %p168_p2 = scmp.eq.s32.totalorder %s934_s25, 1 }
   0x7   : > { %p173_p3 = scmp.ne.s32.totalorder %s856_s22, %s852_s21  ;;  %p174_p4 = scmp.eq.s32.totalorder %s717_s26, 1 }
   0x8   : > { %s949_s30 = scalar_select %p155_p1, %s860_s23, %s157_s28  }
   0x9   : > { %p951_p5 = por %p168_p2, %p167_p0  ;;  %p955_p6 = por %p174_p4, %p173_p3 }
   0xa   : > { %p720_p7 = scmp.ge.s32.totalorder %s864_s24, 1  ;;  %p215_p8 = scmp.lt.s32.totalorder %s864_s24, 3 }
   0xc   : > { %p216_p9 = pnand %p720_p7, %p215_p8 }
   0xd   : > { %v730_v0 = vld [vmem:[%s1190_s1 + $0x20] sm:$0xff] (!%p216_p9)  ;;  %p245_p10 = scmp.lt.s32.totalorder (!%p216_p9), %s934_s25, 1  ;;  %v866_v2 = vmov (!%p216_p9), 0   ;;  %v726_v3 = vld [vmem:[%s1190_s1 + $0x10] sm:$0xff] (!%p216_p9)  ;;  %v724_v4 = vld [vmem:[%s1190_s1 + $0x8] sm:$0xff] (!%p216_p9)  ;;  %s867_s11 = smov (!%p216_p9), 17   ;;  %v263_v24 = vlaneseq (!%p216_p9) }
   0xe   : > { %219 = sbr.rel (%p216_p9) target bundleno = 434 (0x1b2), region = 44  ;;  %v255_v1 = vld [vmem:[%s1190_s1] sm:$0xff] (!%p216_p9)  ;;  %801 = vset.pattern.permute.xlu1 (!%p216_p9), %v866_v2  ;;  %800 = vset.pattern.permute.xlu0 (!%p216_p9), %v866_v2  ;;  %v731_v5 = vld [vmem:[%s1190_s1 + $0x28] sm:$0xff] (!%p216_p9)  ;;  %v728_v6 = vld [vmem:[%s1190_s1 + $0x18] sm:$0xff] (!%p216_p9)  ;;  %s868_s14 = smov (!%p216_p9), 16   ;;  %v875_v15 = vmov (!%p216_p9), 0.0  }
   0xf   : > { %435 = vperm.xlu1 (!%p216_p9), %801, %v730_v0   ;;  %259 = vperm.xlu0 (!%p216_p9), %800, %v255_v1   ;;  %v733_v9 = vld [vmem:[%s1190_s1 + $0x30] sm:$0xff] (!%p216_p9)  ;;  %v735_v10 = vld [vmem:[%s1190_s1 + $0x38] sm:$0xff] (!%p216_p9)  ;;  %s869_s17 = smov (!%p216_p9), 15   ;;  %v737_v11 = vld [vmem:[%s1190_s1 + $0x40] sm:$0xff] (!%p216_p9)  ;;  %s870_s20 = smov (!%p216_p9), 1   ;;  %v264_v27 = vshrl.u32 (!%p216_p9), %v263_v24, 7 }
  0x10   : > { %s871_s26 = smov (!%p216_p9), 127   ;;  %s872_s28 = smov (!%p216_p9), 113   ;;  %v250_v12 = vld [vmem:[%s1192_s3] sm:$0xff] (!%p216_p9)  ;;  %v252_v13 = vld [vmem:[%s1194_s5 + $0x8] sm:$0xff] (!%p216_p9)  ;;  %620 = vmatprep.mubr.f32.mxu0 (!%p216_p9), %v875_v15  ;;  %626 = vmatprep.mubr.f32.mxu1 (!%p216_p9), %v875_v15  ;;  %v1041_v33 = vand.u32 (!%p216_p9), 127, %v263_v24  ;;  %vm549_vm8 = vcmask (!%p216_p9), 64512  }
  0x11   : > { %s873_s29 = smov (!%p216_p9), 112   ;;  %v251_v14 = vld [vmem:[%s1194_s5] sm:$0xff] (!%p216_p9)  ;;  %v1034_v30 = vsub.s32 (!%p216_p9), 0, %v264_v27  ;;  %v1036_v31 = vsub.s32 (!%p216_p9), 1, %v264_v27  ;;  %v732_v38 = vld [vmem:[%s1191_s2 + $0xa] sm:$0x3] (!%p216_p9) }
  0x12   : > { %v256_v32 = vld [vmem:[%s1191_s2] sm:$0x3] (!%p216_p9)  ;;  %v727_v36 = vld [vmem:[%s1191_s2 + $0x4] sm:$0x3] (!%p216_p9)  ;;  %v725_v37 = vld [vmem:[%s1191_s2 + $0x2] sm:$0x3] (!%p216_p9) }
  0x13   : > { %303 = vperm.xlu1 (!%p216_p9), %801, %v726_v3   ;;  %281 = vperm.xlu0 (!%p216_p9), %800, %v724_v4   ;;  %v729_v39 = vld [vmem:[%s1191_s2 + $0x6] sm:$0x3] (!%p216_p9)  ;;  %v266_v40 = vrot.slane (!%p216_p9), %v256_v32, %v1034_v30  ;;  %v270_v41 = vrot.slane (!%p216_p9), %v256_v32, %v1036_v31  ;;  %v1060_v42 = vld [vmem:[%s1191_s2 + $0xc] sm:$0x3] (!%p216_p9)  ;;  %v310_v43 = vrot.slane (!%p216_p9), %v727_v36, %v1034_v30  ;;  %vm446_vm0 = vcmp.lt.s32.totalorder (!%p216_p9), %v1041_v33, 17  ;;  %s747_s12 = sshll.u32 (!%p216_p9), %s934_s25, 9 }
  0x14   : > { %v314_v44 = vrot.slane (!%p216_p9), %v727_v36, %v1036_v31  ;;  %v288_v45 = vrot.slane (!%p216_p9), %v725_v37, %v1034_v30  ;;  %v1069_v46 = vld [vmem:[%s1191_s2 + $0xe] sm:$0x3] (!%p216_p9)  ;;  %v292_v49 = vrot.slane (!%p216_p9), %v725_v37, %v1036_v31  ;;  %v356_v50 = vrot.slane (!%p216_p9), %v732_v38, %v1034_v30  ;;  %v738_v36 = vld [vmem:[%s1191_s2 + $0x10] sm:$0x3] (!%p216_p9)  ;;  %s1145_s16 = scalar_lea.hbm (!%p216_p9), %s1195_s6, %s747_s12 }
  0x15   : > { %s246_s13 = scalar_select %p245_p10, %s934_s25, 1  ;;  %v360_v51 = vrot.slane %v732_v38, %v1036_v31  ;;  %v332_v52 = vrot.slane %v729_v39, %v1034_v30  ;;  %v336_v53 = vrot.slane %v729_v39, %v1036_v31  ;;  %v378_v54 = vrot.slane %v1060_v42, %v1034_v30 }
  0x16   : > { %v382_v55 = vrot.slane %v1060_v42, %v1036_v31  ;;  %vm457_vm1 = vcmp.lt.s32.totalorder %v1041_v33, 16  ;;  %v400_v58 = vrot.slane %v1069_v46, %v1034_v30  ;;  %v404_v59 = vrot.slane %v1069_v46, %v1036_v31 }
  0x17   : > { %s746_s18 = sshll.u32 %s246_s13, 4  ;;  %349 = vperm.xlu1 %801, %v731_v5   ;;  %325 = vperm.xlu0 %800, %v728_v6   ;;  %vm468_vm2 = vcmp.lt.s32.totalorder %v1041_v33, 15  ;;  %vm479_vm3 = vcmp.lt.s32.totalorder %v1041_v33, 1  ;;  %vm490_vm4 = vcmp.lt.s32.totalorder %v1041_v33, 127  ;;  %vm501_vm5 = vcmp.lt.s32.totalorder %v1041_v33, 113 }
  0x18   : > { %s249_s10 = scalar_lea.vmem %s1189_s0, %s746_s18  ;;  %vm512_vm6 = vcmp.lt.s32.totalorder %v1041_v33, 112  ;;  %vm523_vm7 = vcmp.lt.s32.totalorder %v1041_v33, 111  ;;  %s876_s18 = smov [#allocation2]  }
  0x19   : > { %v984_v7 = vld [vmem:[%s249_s10 + $0x8] sm:$0xff]  ;;  %v986_v8 = vld [vmem:[%s249_s10] sm:$0xff]  ;;  %s806_s19 = sshll.u32 %s876_s18, 4  ;;  %s807_s19 = int_to_ptr.vmem [resolvable:$false] %s806_s19 }
  0x1b   : > { %442 = vrot.lane.b32.xlu1 %v984_v7, %s867_s11  ;;  %440 = vrot.lane.b32.xlu0 %v986_v8, %s867_s11  ;;  %s874_s11 = smov 111  }
  0x1f   : > { %453 = vrot.lane.b32.xlu1 %v986_v8, %s868_s14  ;;  %371 = vperm.xlu0 %800, %v733_v9  }
  0x23   : > { %393 = vperm.xlu1 %801, %v735_v10   ;;  %455 = vrot.lane.b32.xlu0 %v984_v7, %s868_s14 }
  0x27   : > { %466 = vrot.lane.b32.xlu1 %v984_v7, %s869_s17  ;;  %464 = vrot.lane.b32.xlu0 %v986_v8, %s869_s17 }
  0x2b   : > { %475 = vrot.lane.b32.xlu1 %v986_v8, %s870_s20  ;;  %415 = vperm.xlu0 %800, %v737_v11  }
  0x2f   : > { %486 = vrot.lane.b32.xlu1 %v986_v8, %s871_s26  ;;  %477 = vrot.lane.b32.xlu0 %v984_v7, %s870_s20  ;;  %s808_s20 = scalar_lea.vmem %s807_s19, 1024 }
  0x33   : > { %497 = vrot.lane.b32.xlu1 %v986_v8, %s872_s28  ;;  %488 = vrot.lane.b32.xlu0 %v984_v7, %s871_s26 }
  0x37   : > { %508 = vrot.lane.b32.xlu1 %v986_v8, %s873_s29  ;;  %499 = vrot.lane.b32.xlu0 %v984_v7, %s872_s28 }
  0x3b   : > { %532 = vperm.xlu1 %801, %v250_v12   ;;  %510 = vrot.lane.b32.xlu0 %v984_v7, %s873_s29  ;;  %s242_s29 = sand.u32 1, %s856_s22  }
  0x3c   : > { %s721_s9 = sshll.u32 %s242_s29, 5  ;;  %s1147_s25 = scalar_lea.sflag [#allocation3], %s242_s29 }
  0x3d   : > { %s244_s10 = scalar_lea.vmem [#allocation2], %s721_s9 }
  0x3f   : > { %521 = vrot.lane.b32.xlu1 %v984_v7, %s874_s11  ;;  %519 = vrot.lane.b32.xlu0 %v986_v8, %s874_s11  ;;  %s655_s11 = sshll.u32 %s244_s10, 4  ;;  %s1140_s11 = int_to_ptr.vmem [resolvable:$true] %s655_s11 }
  0x40   : > { %s802_s17 = scalar_lea.vmem %s1140_s11, 512  ;;  %p809_p0 = scmp.lt.s32.totalorder %s1140_s11, %s807_s19 }
  0x41   : > { %p803_p11 = scmp.ne.s32.totalorder %s1140_s11, %s802_s17  ;;  %p810_p1 = scmp.lt.s32.totalorder %s808_s20, %s802_s17 }
  0x43   : > { %546 = vperm.xlu1 %801, %v252_v13   ;;  %541 = vperm.xlu0 %800, %v251_v14   ;;  %p804_p12 = pnand %p803_p11, %p951_p5  ;;  %p811_p2 = por %p810_p1, %p809_p0 }
  0x45   : > { %p805_p13 = pneg %p804_p12 }
  0x47   : > { %p812_p3 = pnand %p811_p2, %p805_p13 }
  0x8e   : > { %v436_v16 = vpop.permute.xlu1 %435  ;;  %v260_v17 = vpop.permute.xlu0 %259 }
  0x8f   : > { %v273_v60 = vmul.f32 %v266_v40, %v260_v17  ;;  %v274_v61 = vmul.f32 %v270_v41, %v260_v17  ;;  %v438_v6 = vmul.f32 %v436_v16, %v986_v8  ;;  %v439_v9 = vmul.f32 %v436_v16, %v984_v7 }
  0x92   : > { %v1024_v18 = vpop.permute.xlu1 %303  ;;  %v282_v19 = vpop.permute.xlu0 %281 }
  0x93   : > { %v295_v2 = vmul.f32 %v288_v45, %v282_v19  ;;  %v296_v3 = vmul.f32 %v292_v49, %v282_v19  ;;  %v317_v12 = vmul.f32 %v310_v43, %v1024_v18  ;;  %v318_v13 = vmul.f32 %v314_v44, %v1024_v18 }
  0x96   : > { %v1026_v20 = vpop.permute.xlu1 %349  ;;  %v1028_v21 = vpop.permute.xlu0 %325 }
  0x97   : > { %v340_v8 = vmul.f32 %v336_v53, %v1028_v21  ;;  %v363_v18 = vmul.f32 %v356_v50, %v1026_v20 }
  0x9a   : > { %v443_v22 = vpop.permute.xlu1 %442  ;;  %v441_v23 = vpop.permute.xlu0 %440 }
  0x9b   : > { %v447_v56 = vsel %vm446_vm0, %v441_v23, %v443_v22  ;;  %v448_v57 = vsel %vm446_vm0, %v443_v22, %v441_v23  ;;  %v339_v22 = vmul.f32 %v332_v52, %v1028_v21  ;;  %v426_v52 = vrot.slane %v738_v36, %v1036_v31 }
  0x9c   : > { %v449_v4 = vmul.f32 %v448_v57, %v273_v60  ;;  %v450_v5 = vmul.f32 %v447_v56, %v274_v61 }
  0x9e   : > { %v454_v25 = vpop.permute.xlu1 %453  ;;  %v1030_v26 = vpop.permute.xlu0 %371  ;;  %v451_v23 = vadd.f32 %v449_v4, %v438_v6  ;;  %v452_v24 = vadd.f32 %v450_v5, %v439_v9 }
  0x9f   : > { %v385_v41 = vmul.f32 %v378_v54, %v1030_v26 }
  0xa2   : > { %v1032_v28 = vpop.permute.xlu1 %393  ;;  %v456_v29 = vpop.permute.xlu0 %455 }
  0xa3   : > { %v458_v0 = vsel %vm457_vm1, %v454_v25, %v456_v29  ;;  %v459_v1 = vsel %vm457_vm1, %v456_v29, %v454_v25  ;;  %v364_v29 = vmul.f32 %v360_v51, %v1026_v20  ;;  %v386_v20 = vmul.f32 %v382_v55, %v1030_v26 }
  0xa4   : > { %v460_v14 = vmul.f32 %v459_v1, %v295_v2  ;;  %v461_v15 = vmul.f32 %v458_v0, %v296_v3  ;;  %v407_v49 = vmul.f32 %v400_v58, %v1032_v28  ;;  %v408_v50 = vmul.f32 %v404_v59, %v1032_v28 }
  0xa5   : > { %v422_v51 = vrot.slane %v738_v36, %v1034_v30 }
  0xa6   : > { %v467_v34 = vpop.permute.xlu1 %466  ;;  %v465_v35 = vpop.permute.xlu0 %464 }
  0xa7   : > { %v469_v10 = vsel %vm468_vm2, %v465_v35, %v467_v34  ;;  %v470_v11 = vsel %vm468_vm2, %v467_v34, %v465_v35  ;;  %v462_v34 = vadd.f32 %v460_v14, %v451_v23  ;;  %v463_v35 = vadd.f32 %v461_v15, %v452_v24 }
  0xa8   : > { %v471_v25 = vmul.f32 %v470_v11, %v317_v12  ;;  %v472_v27 = vmul.f32 %v469_v10, %v318_v13 }
  0xaa   : > { %v476_v47 = vpop.permute.xlu1 %475  ;;  %v1071_v48 = vpop.permute.xlu0 %415  ;;  %v473_v44 = vadd.f32 %v471_v25, %v462_v34  ;;  %v474_v45 = vadd.f32 %v472_v27, %v463_v35 }
  0xab   : > { %v429_v31 = vmul.f32 %v422_v51, %v1071_v48 }
  0xae   : > { %v487_v62 = vpop.permute.xlu1 %486  ;;  %v478_v63 = vpop.permute.xlu0 %477 }
  0xaf   : > { %v480_v7 = vsel %vm479_vm3, %v476_v47, %v478_v63  ;;  %v481_v16 = vsel %vm479_vm3, %v478_v63, %v476_v47 }
  0xb0   : > { %v482_v37 = vmul.f32 %v481_v16, %v339_v22  ;;  %v483_v38 = vmul.f32 %v480_v7, %v340_v8 }
  0xb2   : > { %v498_v17 = vpop.permute.xlu1 %497  ;;  %v489_v19 = vpop.permute.xlu0 %488  ;;  %v484_v53 = vadd.f32 %v482_v37, %v473_v44  ;;  %v485_v26 = vadd.f32 %v483_v38, %v474_v45 }
  0xb3   : > { %v491_v32 = vsel %vm490_vm4, %v487_v62, %v489_v19  ;;  %v492_v21 = vsel %vm490_vm4, %v489_v19, %v487_v62  ;;  %v430_v62 = vmul.f32 %v426_v52, %v1071_v48  ;;  %v253_v48 = vld [vmem:[%s1193_s4] sm:$0xff] }
  0xb4   : > { %v493_v46 = vmul.f32 %v491_v32, %v363_v18  ;;  %v494_v47 = vmul.f32 %v492_v21, %v364_v29 }
  0xb6   : > { %v509_v39 = vpop.permute.xlu1 %508  ;;  %v500_v40 = vpop.permute.xlu0 %499  ;;  %v495_v58 = vadd.f32 %v493_v46, %v484_v53  ;;  %v496_v28 = vadd.f32 %v494_v47, %v485_v26 }
  0xb7   : > { %v502_v42 = vsel %vm501_vm5, %v498_v17, %v500_v40  ;;  %v503_v43 = vsel %vm501_vm5, %v500_v40, %v498_v17  ;;  %v254_v17 = vld [vmem:[%s1193_s4 + $0x8] sm:$0xff] }
  0xb8   : > { %v504_v54 = vmul.f32 %v502_v42, %v385_v41  ;;  %v505_v55 = vmul.f32 %v503_v43, %v386_v20 }
  0xba   : > { %v533_v56 = vpop.permute.xlu1 %532  ;;  %v511_v57 = vpop.permute.xlu0 %510  ;;  %v506_v63 = vadd.f32 %v504_v54, %v495_v58  ;;  %v507_v0 = vadd.f32 %v505_v55, %v496_v28 }
  0xbb   : > { %v513_v60 = vsel %vm512_vm6, %v509_v39, %v511_v57  ;;  %v514_v61 = vsel %vm512_vm6, %v511_v57, %v509_v39 }
  0xbc   : > { %v515_v59 = vmul.f32 %v513_v60, %v407_v49  ;;  %v516_v30 = vmul.f32 %v514_v61, %v408_v50 }
  0xbe   : > { %v522_v1 = vpop.permute.xlu1 %521  ;;  %v520_v2 = vpop.permute.xlu0 %519  ;;  %v517_v5 = vadd.f32 %v515_v59, %v506_v63  ;;  %v518_v6 = vadd.f32 %v516_v30, %v507_v0 }
  0xbf   : > { %v524_v3 = vsel %vm523_vm7, %v520_v2, %v522_v1  ;;  %v525_v4 = vsel %vm523_vm7, %v522_v1, %v520_v2 }
  0xc0   : > { %v526_v9 = vmul.f32 %v524_v3, %v429_v31  ;;  %v527_v10 = vmul.f32 %v525_v4, %v430_v62 }
  0xc2   : > { %v529_v33 = vadd.f32 %v527_v10, %v518_v6  ;;  %v528_v11 = vadd.f32 %v526_v9, %v517_v5  ;;  %v547_v19 = vpop.permute.xlu1 %546  ;;  %v542_v22 = vpop.permute.xlu0 %541 }
  0xc4   : > { %v536_v12 = vadd.f32 %v533_v56, %v529_v33  ;;  %v535_v13 = vadd.f32 %v533_v56, %v528_v11 }
  0xc6   : > { %v538_v14 = vmax.f32 %v536_v12, 0.0  ;;  %v537_v15 = vmax.f32 %v535_v13, 0.0 }
  0xc8   : > { %556 = vmatprep.subr.mxu0 %v538_v14  ;;  %748 = vmatprep.subr.mxu1 %v538_v14 }
  0xc9   : > { %557 = vmatpush1.msra.mxu0 %v537_v15  ;;  %749 = vmatpush1.msra.mxu1 %v537_v15 }
  0xca   : > { %739 = vmatmul.mubr.msk.f32.vlgmr.msra.gmra.mrb[0].mxu0 %vm549_vm8, %v253_v48  ;;  %740 = vmatmul.mubr.msk.f32.vlgmr.msra.gmra.mrb[0].mxu1 %vm549_vm8, %v254_v17 }
 0x19d   : > { %v622_v8 = vpop.f32.mrb[0].mxu0  ;;  %v628_v7 = vpop.f32.mrb[0].mxu1 }
 0x19e   : > { %v623_v16 = vadd.f32 %v622_v8, %v542_v22  ;;  %v629_v23 = vadd.f32 %v628_v7, %v547_v19  ;;  %v624_v24 = vpop.f32.mrb[1].mxu0  ;;  %v630_v25 = vpop.f32.mrb[1].mxu1 }
 0x19f   : > { %v625_v27 = vadd.f32 %v624_v24, %v542_v22  ;;  %v631_v18 = vadd.f32 %v630_v25, %v547_v19 }
 0x1a0   : > { %v633_v29 = vmax.f32 %v623_v16, 0.0  ;;  %v635_v32 = vmax.f32 %v629_v23, 0.0 }
 0x1a1   : > { %v634_v21 = vmax.f32 %v625_v27, 0.0  ;;  %v636_v34 = vmax.f32 %v631_v18, 0.0 }
 0x1a2   : > { %637 = vst [vmem:[%s244_s10] sm:$0xff] %v633_v29  ;;  %639 = vst [vmem:[%s244_s10 + $0x10] sm:$0xff] %v635_v32 }
 0x1a3   : > { %638 = vst [vmem:[%s244_s10 + $0x8] sm:$0xff] %v634_v21  ;;  %640 = vst [vmem:[%s244_s10 + $0x18] sm:$0xff] %v636_v34 }
 0x1a4   : > { %815 = shalt.err (!%p812_p3)
}
 0x1a5   : > { %s816_s26 = scalar_lea.hbm %s1145_s16, 512  ;;  %s820_s9 = scalar_lea.hbm %s1195_s6, 1024 }
 0x1a6   : > { %p817_p4 = scmp.ne.s32.totalorder %s1145_s16, %s816_s26  ;;  %p821_p9 = scmp.lt.u32.totalorder %s1145_s16, %s1195_s6 }
 0x1a7   : > { %p822_p10 = scmp.lt.u32.totalorder %s820_s9, %s816_s26  ;;  %p824_p12 = scmp.lt.u32.totalorder %s816_s26, %s1145_s16 }
 0x1a8   : > { %p818_p7 = pnand %p817_p4, %p951_p5 }
 0x1a9   : > { %p823_p11 = por %p822_p10, %p821_p9 }
 0x1aa   : > { %p819_p8 = pneg %p818_p7 }
 0x1ab   : > { %p825_p13 = por %p824_p12, %p823_p11 }
 0x1ad   : > { %p826_p0 = pnand %p825_p13, %p819_p8 }
 0x1af   : > { %829 = shalt.err (!%p826_p0)
}
 0x1b0   : > { %s877_s13 = smov 256  }
 0x1b1   : > { %750 = dma.vmem_to_hbm [thread:$0]  (%p951_p5), %s1140_s11, 512, %s1145_s16, %s1147_s25, %s877_s13, %s877_s13, %s868_s14  }
 0x1b2 PF: > { %p756_p1 = scmp.ge.s32.totalorder %s864_s24, 2  ;;  %s670_s15 = sand.u32 1, %s852_s21  }
 0x1b3   : > { %s671_s17 = scalar_lea.sflag [#allocation3], %s670_s15 }
 0x1b4   : > { %p753_p2 = pnand %p756_p1, %p955_p6 }
 0x1b6   : > { %847 = dma.done.wait (!%p753_p2), %s671_s17, 512  }
 0x1b7   : > { %849 = vsyncadd (!%p753_p2), %s671_s17, 4294966784  ;;  %p16_p3 = scmp.ge.s32.totalorder %s938_s27, 4   ;;  %s1198_s21 = smov %s856_s22 }
 0x1b8   : > { %s1199_s22 = smov %s860_s23  ;;  %s1200_s23 = smov %s949_s30 }
 0x1b9   : > { %s1201_s24 = smov %s938_s27  ;;  %18 = sbr.rel (!%p16_p3) target bundleno = 3 (0x3), region = 94 }
 0x1c0   :  { %676 = vsyncpa [#allocation3], 1 }
 0x1c1   :  { %678 = vsyncpa [#allocation3 + $0x1], 1 }

</bundles_post_ra>
